<compile_context>
chip_gen: v5e
topology: v5e:2x2
jax: 0.10.0
libtpu: 0.0.40
codegen_flags: <defaults>
</compile_context>

<pallas_src>
import jax
import jax.numpy as jnp
from jax.experimental import pallas as pl
from jax.experimental.pallas import tpu as pltpu


def _scale_mul_kernel(scale_ref, x_ref, o_ref):
    # scale_ref: (TC, 1), x_ref/o_ref: (TC, TH). Lane-broadcast multiply on the
    # VPU; explicit downcast covers mixed-dtype inputs.
    o_ref[...] = (scale_ref[...] * x_ref[...]).astype(o_ref.dtype)


def _round_up(x, m):
    return ((x + m - 1) // m) * m


def _vmem_budget_bytes():
    """~75% of this generation's per-core VMEM; falls back to a v7x-safe 48 MiB."""
    try:
        cap = int(pltpu.get_tpu_info().vmem_capacity_bytes)
    except Exception:  # non-TPU trace / older runtime
        cap = 64 * 1024 * 1024
    return cap * 3 // 4


_MAX_LANE_TILE = 8192  # lanes per tile cap for very large spatial maps


def channel_scale_mul(scale, x, *, target_tile_bytes=8 * 1024 * 1024,
                      donate_x=False):
    """scale: [N, C, 1, 1], x: [N, C, H, W] -> scale * x (broadcast multiply)."""
    n, c, h, w = x.shape
    assert scale.shape == (n, c, 1, 1), scale.shape
    nc, hw = n * c, h * w
    out_dtype = jnp.result_type(scale.dtype, x.dtype)

    x2d = x.reshape(nc, hw)
    s2d = scale.reshape(nc, 1)

    x_item = jnp.dtype(x.dtype).itemsize
    out_item = jnp.dtype(out_dtype).itemsize
    s_item = jnp.dtype(scale.dtype).itemsize

    # ---- lane (spatial) tiling ----------------------------------------------
    if hw <= _MAX_LANE_TILE:
        tile_hw = hw                          # full-extent lane block (always legal)
        lanes_padded = _round_up(hw, 128)     # VMEM lane padding for byte accounting
    else:
        tile_hw = _MAX_LANE_TILE              # 128-multiple; ragged last tile is masked
        lanes_padded = tile_hw

    # ---- row (channel) tiling -----------------------------------------------
    # Sublane packing of the narrowest dtype involved (8 / 16 / 32 rows).
    min_item = min(x_item, out_item, s_item)
    sub = max(8, 32 // min_item)

    # Double-buffered per-row footprint: in tile + out tile + 128-lane-padded scale.
    per_row_db_bytes = 2 * (lanes_padded * (x_item + out_item) + 128 * s_item)
    vmem_budget = _vmem_budget_bytes()

    rows_from_target = max(1, target_tile_bytes // (lanes_padded * x_item))
    rows_from_vmem = max(1, vmem_budget // per_row_db_bytes)
    rows = min(rows_from_target, rows_from_vmem)
    rows = max(sub, (rows // sub) * sub)

    tile_c = min(nc, rows)
    # Keep >= 2 row tiles when possible so megacore (2 TCs on v7x) can shard rows.
    if tile_c >= nc and nc >= 2 * sub:
        tile_c = _round_up(-(-nc // 2), sub)

    grid = (pl.cdiv(nc, tile_c), pl.cdiv(hw, tile_hw))

    # ---- VMEM limit: actual footprint + headroom, capped to generation budget -
    est = tile_c * per_row_db_bytes
    vmem_limit = int(min(vmem_budget, max(est + est // 4, 16 * 1024 * 1024)))

    io_aliases = {}
    if donate_x and out_dtype == x.dtype:
        io_aliases = {1: 0}  # multiply in place on the feature-map buffer

    out2d = pl.pallas_call(
        _scale_mul_kernel,
        out_shape=jax.ShapeDtypeStruct((nc, hw), out_dtype),
        grid_spec=pltpu.PrefetchScalarGridSpec(
            num_scalar_prefetch=0,
            grid=grid,
            in_specs=[
                # Scale block depends only on the row-tile index, so it is not
                # re-fetched while the lane axis is traversed.
                pl.BlockSpec((tile_c, 1), lambda i, j: (i, 0)),
                pl.BlockSpec((tile_c, tile_hw), lambda i, j: (i, j)),
            ],
            out_specs=pl.BlockSpec((tile_c, tile_hw), lambda i, j: (i, j)),
        ),
        compiler_params=pltpu.CompilerParams(
            dimension_semantics=("parallel", "parallel"),
            vmem_limit_bytes=vmem_limit,
        ),
        input_output_aliases=io_aliases,
    )(s2d, x2d)

    return out2d.reshape(n, c, h, w)


if __name__ == "__main__":
    key = jax.random.PRNGKey(0)
    k1, k2, k3, k4 = jax.random.split(key, 4)

    # Small shapes consistent with the module (SE-style channel gating).
    x_small = jax.random.normal(k1, (2, 4, 16, 16), dtype=jnp.float32)   # feature map
    s_small = jax.random.normal(k2, (2, 4, 1, 1), dtype=jnp.float32)     # per-channel scale
    out = jax.block_until_ready(channel_scale_mul(s_small, x_small))
    ref = s_small * x_small
    assert out.shape == ref.shape and out.dtype == ref.dtype
    assert jnp.allclose(out, ref, atol=1e-6, rtol=1e-6)

    # The module's actual shape (1, 768, 14, 14): exercises the non-128-multiple
    # lane extent, the >=2-row-tile split, and the in-place alias path.
    x_spec = jax.random.normal(k3, (1, 768, 14, 14), dtype=jnp.float32)
    s_spec = jax.random.normal(k4, (1, 768, 1, 1), dtype=jnp.float32)
    ref2 = s_spec * x_spec
    out2 = jax.block_until_ready(channel_scale_mul(s_spec, x_spec, donate_x=True))
    assert out2.shape == ref2.shape and out2.dtype == ref2.dtype
    assert jnp.allclose(out2, ref2, atol=1e-6, rtol=1e-6)

    print("KERNEL_OK")
</pallas_src>

<mosaic_0001>
module attributes {stable_mosaic.version = 11 : i64} {
  func.func @_scale_mul_kernel(%arg0: i32, %arg1: i32, %arg2: memref<8x1xf32, #tpu.memory_space<vmem>>, %arg3: memref<8x256xf32, #tpu.memory_space<vmem>>, %arg4: memref<8x256xf32, #tpu.memory_space<vmem>>) attributes {dimension_semantics = [#tpu.dimension_semantics<parallel>, #tpu.dimension_semantics<parallel>], iteration_bounds = array<i64: 1, 1>, scalar_prefetch = 0 : i64, scratch_operands = 0 : i64, tpu.core_type = #tpu.core_type<tc>, window_params = [{transform_indices = @transform_0, window_bounds = array<i64: 8, 1>}, {transform_indices = @transform_1, window_bounds = array<i64: 8, 256>}, {transform_indices = @transform_2, window_bounds = array<i64: 8, 256>}]} {
    %c0 = arith.constant 0 : index
    %c0_0 = arith.constant 0 : index
    %0 = vector.load %arg2[%c0, %c0_0] : memref<8x1xf32, #tpu.memory_space<vmem>>, vector<8x1xf32>
    %c0_1 = arith.constant 0 : index
    %c0_2 = arith.constant 0 : index
    %1 = vector.load %arg3[%c0_1, %c0_2] : memref<8x256xf32, #tpu.memory_space<vmem>>, vector<8x256xf32>
    %2 = vector.broadcast %0 : vector<8x1xf32> to vector<8x256xf32>
    %3 = arith.mulf %2, %1 : vector<8x256xf32>
    %c0_3 = arith.constant 0 : index
    %c0_4 = arith.constant 0 : index
    %4 = vector.load %arg4[%c0_3, %c0_4] : memref<8x256xf32, #tpu.memory_space<vmem>>, vector<8x256xf32>
    tpu.vector_store %arg4[%c0_3, %c0_4], %3 {strides = array<i32>} : memref<8x256xf32, #tpu.memory_space<vmem>>, vector<8x256xf32>,
    return
  }
  func.func @transform_0(%arg0: i32, %arg1: i32) -> (i32, i32) {
    %c0_i32 = arith.constant 0 : i32
    %c0_i32_0 = arith.constant 0 : i32
    return %arg0, %c0_i32 : i32, i32
  }
  func.func @transform_1(%arg0: i32, %arg1: i32) -> (i32, i32) {
    %c0_i32 = arith.constant 0 : i32
    return %arg0, %arg1 : i32, i32
  }
  func.func @transform_2(%arg0: i32, %arg1: i32) -> (i32, i32) {
    %c0_i32 = arith.constant 0 : i32
    return %arg0, %arg1 : i32, i32
  }
}

</mosaic_0001>

<bundles_post_ra>
// kernel: tpu_custom_call.1
= control target key start
LH: loop header
LB: loop body
LE: loop exit
PB: predicated region body
PF: predicated region fallthrough
CT: control target
= control target key end

     0   :  { %7 = vsyncpa [#allocation3], 0  ;;  %s138_s0 = inlined_call_operand.vmem [shape: f32[8,1], index: 0, kind: input, shape index: {}]   ;;  %s139_s1 = inlined_call_operand.hbm [shape: f32[8,256], index: 1, kind: input, shape index: {}]   ;;  %s140_s2 = inlined_call_operand.hbm [shape: f32[8,256], index: 2, kind: output, shape index: {}]  }
   0x1   :  { %8 = vsyncpa [#allocation4], 0  ;;  %s16_s11 = sshll.u32 %s139_s1, 4  ;;  %s111_s12 = smov [#allocation2]   ;;  %s17_s11 = int_to_ptr.hbm [resolvable:$true] %s16_s11 }
   0x2   :  { %s18_s13 = sshll.u32 %s111_s12, 4  ;;  %s19_s13 = int_to_ptr.vmem [resolvable:$true] %s18_s13 }
   0x3   :  { %21 = dma.hbm_to_vmem [thread:$0]  %s17_s11, 256, %s19_s13, [#allocation3]  }
   0x4   :  { %107 = dma.done.wait [#allocation3], 256  }
   0x5   :  { %108 = vsyncadd [#allocation3], 4294967040  ;;  %v112_v0 = vmov 0   ;;  %v26_v1 = vld [vmem:[%s138_s0] sm:$0xff]  ;;  %v28_v3 = vld [vmem:[#allocation2 + $0x8] sm:$0xff]  ;;  %s113_s16 = smov [#allocation5]  }
   0x6   :  { %58 = vset.pattern.permute.xlu0 %v112_v0  ;;  %v27_v2 = vld [vmem:[#allocation2] sm:$0xff]  ;;  %s43_s17 = sshll.u32 %s113_s16, 4  ;;  %s45_s19 = sshll.u32 %s140_s2, 4  ;;  %s44_s17 = int_to_ptr.vmem [resolvable:$true] %s43_s17  ;;  %s46_s19 = int_to_ptr.hbm [resolvable:$true] %s45_s19 }
   0x7   :  { %31 = vperm.xlu0 %58, %v26_v1  }
  0x79   :  { %v32_v4 = vpop.permute.xlu0 %31 }
  0x7a   :  { %v34_v5 = vmul.f32 %v32_v4, %v27_v2  ;;  %v35_v6 = vmul.f32 %v32_v4, %v28_v3 }
  0x7c   :  { %36 = vst [vmem:[#allocation5] sm:$0xff] %v34_v5 }
  0x7d   :  { %37 = vst [vmem:[#allocation5 + $0x8] sm:$0xff] %v35_v6 }
  0x7e   :  { %48 = dma.vmem_to_hbm [thread:$0]  %s44_s17, 256, %s46_s19, [#allocation4]  }
  0x7f   :  { %109 = dma.done.wait [#allocation4], 256  }
  0x80   :  { %110 = vsyncadd [#allocation4], 4294967040 }
  0x81   :  { %53 = vsyncpa [#allocation3], 1 }
  0x82   :  { %54 = vsyncpa [#allocation4], 1 }

</bundles_post_ra>
